<compile_context>
chip_gen: v7x
topology: tpu7x:2x2x1
jax: 0.10.0
libtpu: 0.0.40
codegen_flags: <defaults>
</compile_context>

<pallas_src>
from functools import partial

import jax
import jax.numpy as jnp
import numpy as np
from jax.experimental import pallas as pl
from jax.experimental.pallas import tpu as pltpu


def _round_up(x, m):
    return (x + m - 1) // m * m


def _nn_embed_kernel(x_ref, o_ref, pad_ref, *, window_size, pad, base, out_len):
    # x_ref  : (BB, C, L)     channels-first input block
    # o_ref  : (BB, W, Lout)  output block
    # pad_ref: (BB, Lpad)     f32 scratch; avg lives at lanes [base, base+L),
    #                         lanes [base-pad, base) and [base+L, Lpad) are zero.
    BB, C, L = x_ref.shape
    W = window_size
    lpad = pad_ref.shape[1]

    # Zero ONLY the padding lane ranges (the middle is overwritten by `avg` just
    # below).  Done unconditionally every grid step: scratch is per-core and
    # gating on program_id == 0 is wrong under megacore "parallel" splitting.
    if pad > 0:
        pad_ref[:, pl.ds(base - pad, pad)] = jnp.zeros((BB, pad), jnp.float32)
    tail = lpad - (base + L)
    if tail > 0:
        pad_ref[:, pl.ds(base + L, tail)] = jnp.zeros((BB, tail), jnp.float32)

    # avg_layer: frozen Conv1d(C, 1, k=1, weight=1/C) == channel mean (f32 acc).
    # `base` is a multiple of 128, so this store starts lane-aligned.
    avg = jnp.mean(x_ref[...].astype(jnp.float32), axis=1)            # (BB, L)
    pad_ref[:, pl.ds(base, L)] = avg

    # nearby_neighbors_layer: identity Conv1d(k=W, pad=W//2), i.e.
    #   out[b, k, t] = pad_buf[b, (base - pad) + t + k]
    # Build the output in 8-sublane slabs: one full-width store per group of 8 k
    # values instead of 8 masked single-sublane stores.  Boundary masking comes
    # for free from the pre-zeroed padding lanes (no iota/compare/where).
    n_groups = (W + 7) // 8

    @pl.loop(0, BB)                       # dynamic batch loop (bounded live ranges)
    def _(b):
        for g in range(n_groups):         # short static unroll over window groups
            k0 = 8 * g
            gsz = min(8, W - k0)
            rows = [
                pad_ref[pl.ds(b, 1), pl.ds(base - pad + k0 + r, out_len)]  # (1, Lout)
                for r in range(gsz)
            ]
            slab = rows[0] if gsz == 1 else jnp.concatenate(rows, axis=0)  # (gsz, Lout)
            o_ref[b, pl.ds(k0, gsz), :] = slab.astype(o_ref.dtype)


def _vmem_budget_and_limit():
    """(per-step tile budget, scoped-VMEM limit), gated on the actual chip."""
    try:
        phys = int(getattr(pltpu.get_tpu_info(), "vmem_capacity_bytes", 64 << 20))
    except Exception:                      # query unavailable -> conservative
        phys = 64 << 20
    if phys >= (96 << 20):                 # v5e / v6e: 128 MiB physical VMEM
        return 40 << 20, 96 << 20
    return 12 << 20, 32 << 20              # v7x: 64 MiB physical, 32 MiB scoped


def _pick_batch_block(B, C, L, W, out_len, lpad, budget_bytes):
    """Largest divisor of B whose per-step working set fits the VMEM budget,
    preferring a grid extent >= 2 so the 'parallel' axis has work for megacore."""
    c8 = _round_up(max(C, 1), 8)
    w8 = _round_up(W, 8)
    l128 = _round_up(L, 128)
    o128 = _round_up(out_len, 128)
    per_b = 4 * (2 * c8 * l128 + 2 * w8 * o128 + lpad)   # f32, double-buffered in/out
    max_bb = max(1, budget_bytes // per_b)
    divs = [d for d in range(1, B + 1) if B % d == 0 and d <= max_bb]
    pref = [d for d in divs if B // d >= 2]               # keep >= 2 grid steps
    return max(pref) if pref else max(divs)


def nearest_neighbors_embed(src, window_size, *, channels_first=False):
    """Forward of PyTorch NearestNeighborsEmbed.

    src: (B, L, C) by default (the module's input layout), or (B, C, L) when
    channels_first=True (avoids the wrapper transpose for C > 1).
    Returns (B, W, Lout) with Lout = L + 2*(W//2) - W + 1.
    """
    if channels_first:
        B, C, L = src.shape
        x = src
    else:
        B, L, C = src.shape
        # For the module default C == 1 this is a free reshape; for C > 1 it is a
        # real transpose (one extra HBM pass ~ C/W of the output traffic) -- feed
        # channels-first data with channels_first=True to avoid it.
        x = src.reshape(B, 1, L) if C == 1 else jnp.transpose(src, (0, 2, 1))

    W = window_size
    pad = W // 2
    out_len = L + 2 * pad - W + 1          # == L for odd W, L + 1 for even W (Conv1d)
    base = 0 if pad == 0 else _round_up(pad, 128)   # lane-aligned start of avg row
    lpad = _round_up(base + L + pad, 128)  # scratch lane width (covers all row reads)

    budget, vmem_limit = _vmem_budget_and_limit()
    BB = _pick_batch_block(B, C, L, W, out_len, lpad, budget)

    kernel = partial(_nn_embed_kernel, window_size=W, pad=pad, base=base,
                     out_len=out_len)

    itemsize = src.dtype.itemsize
    cost = pl.CostEstimate(
        flops=B * C * L,                   # channel-mean adds; the rest is movement
        transcendentals=0,
        bytes_accessed=itemsize * (B * C * L + B * W * out_len),
    )

    # NOTE(perf): production L (hence Lout) should be a multiple of 128 so the
    # dominant slab stores are unmasked lane-dense vst's (largest lever on v5e).
    # NOTE(perf, v7x): when B // BB < 2, a second 'parallel' grid axis over window
    # groups (out block (BB, WG, Lout), mean recomputed per group) would both
    # guarantee megacore work and shrink the output tile; not needed for the
    # shapes exercised here.
    return pl.pallas_call(
        kernel,
        out_shape=jax.ShapeDtypeStruct((B, W, out_len), src.dtype),
        grid=(B // BB,),
        in_specs=[pl.BlockSpec((BB, C, L), lambda i: (i, 0, 0))],
        out_specs=pl.BlockSpec((BB, W, out_len), lambda i: (i, 0, 0)),
        scratch_shapes=[pltpu.VMEM((BB, lpad), jnp.float32)],
        compiler_params=pltpu.CompilerParams(
            dimension_semantics=("parallel",),
            vmem_limit_bytes=vmem_limit),
        cost_estimate=cost,
    )(x)


def _reference(src, window_size):
    # Pure-JAX reference of the PyTorch forward (handles odd and even W).
    B, L, C = src.shape
    pad = window_size // 2
    out_len = L + 2 * pad - window_size + 1
    avg = jnp.mean(src, axis=2)                         # (B, L)
    avg_pad = jnp.pad(avg, ((0, 0), (pad, pad)))        # (B, L + 2*pad)
    rows = [avg_pad[:, k:k + out_len] for k in range(window_size)]
    return jnp.stack(rows, axis=1)                      # (B, W, Lout)


if __name__ == "__main__":
    key = jax.random.PRNGKey(0)
    configs = [
        # (B, L, C, window_size)
        (2, 16, 4, 7),     # small demo (odd W)
        (2, 16, 4, 4),     # even W: Lout = L + 1, matching Conv1d padding semantics
        (2, 128, 1, 49),   # module defaults: in_channels=1, window_size=49
        (4, 256, 1, 49),   # multiple 8-row slab groups, lane-dense Lout
    ]
    for (B, L, C, W) in configs:
        key, sub = jax.random.split(key)
        src = jax.random.normal(sub, (B, L, C), dtype=jnp.float32)
        out = jax.block_until_ready(nearest_neighbors_embed(src, W))
        ref = _reference(src, W)
        np.testing.assert_allclose(np.asarray(out), np.asarray(ref),
                                   rtol=1e-5, atol=1e-5)

    print("KERNEL_OK")
</pallas_src>

<mosaic_0001>
module attributes {stable_mosaic.version = 11 : i64} {
  func.func @_nn_embed_kernel(%arg0: i32, %arg1: memref<1x4x16xf32, #tpu.memory_space<vmem>>, %arg2: memref<1x7x16xf32, #tpu.memory_space<vmem>>, %arg3: memref<1x256xf32, #tpu.memory_space<vmem>>) attributes {dimension_semantics = [#tpu.dimension_semantics<parallel>], iteration_bounds = array<i64: 2>, scalar_prefetch = 0 : i64, scratch_operands = 1 : i64, tpu.core_type = #tpu.core_type<tc>, window_params = [{transform_indices = @transform_0, window_bounds = array<i64: 1, 4, 16>}, {transform_indices = @transform_1, window_bounds = array<i64: 1, 7, 16>}]} {
    %cst = arith.constant 0.000000e+00 : f32
    %0 = vector.broadcast %cst : f32 to vector<1x3xf32>
    %c0 = arith.constant 0 : index
    %c125 = arith.constant 125 : index
    %1 = vector.load %arg3[%c0, %c125] : memref<1x256xf32, #tpu.memory_space<vmem>>, vector<1x3xf32>
    tpu.vector_store %arg3[%c0, %c125], %0 {strides = array<i32>} : memref<1x256xf32, #tpu.memory_space<vmem>>, vector<1x3xf32>,
    %cst_0 = arith.constant 0.000000e+00 : f32
    %2 = vector.broadcast %cst_0 : f32 to vector<1x112xf32>
    %c0_1 = arith.constant 0 : index
    %c144 = arith.constant 144 : index
    %3 = vector.load %arg3[%c0_1, %c144] : memref<1x256xf32, #tpu.memory_space<vmem>>, vector<1x112xf32>
    tpu.vector_store %arg3[%c0_1, %c144], %2 {strides = array<i32>} : memref<1x256xf32, #tpu.memory_space<vmem>>, vector<1x112xf32>,
    %c0_2 = arith.constant 0 : index
    %c0_3 = arith.constant 0 : index
    %c0_4 = arith.constant 0 : index
    %4 = vector.load %arg1[%c0_2, %c0_3, %c0_4] : memref<1x4x16xf32, #tpu.memory_space<vmem>>, vector<1x4x16xf32>
    %cst_5 = arith.constant dense<0.000000e+00> : vector<1x16xf32>
    %5 = vector.multi_reduction <add>, %4, %cst_5 [1] : vector<1x4x16xf32> to vector<1x16xf32>
    %cst_6 = arith.constant 4.000000e+00 : f32
    %6 = vector.broadcast %cst_6 : f32 to vector<1x16xf32>
    %7 = arith.divf %5, %6 : vector<1x16xf32>
    %c0_7 = arith.constant 0 : index
    %c128 = arith.constant 128 : index
    %8 = vector.load %arg3[%c0_7, %c128] : memref<1x256xf32, #tpu.memory_space<vmem>>, vector<1x16xf32>
    tpu.vector_store %arg3[%c0_7, %c128], %7 {strides = array<i32>} : memref<1x256xf32, #tpu.memory_space<vmem>>, vector<1x16xf32>,
    %c0_i32 = arith.constant 0 : i32
    %c1_i32 = arith.constant 1 : i32
    %9 = arith.muli %c0_i32, %c1_i32 : i32
    %c0_i32_8 = arith.constant 0 : i32
    %10 = arith.addi %c0_i32_8, %9 : i32
    %11 = arith.index_cast %10 : i32 to index
    %c125_9 = arith.constant 125 : index
    %12 = vector.load %arg3[%11, %c125_9] : memref<1x256xf32, #tpu.memory_space<vmem>>, vector<1x16xf32>
    %13 = arith.index_cast %10 : i32 to index
    %c126 = arith.constant 126 : index
    %14 = vector.load %arg3[%13, %c126] : memref<1x256xf32, #tpu.memory_space<vmem>>, vector<1x16xf32>
    %15 = arith.index_cast %10 : i32 to index
    %c127 = arith.constant 127 : index
    %16 = vector.load %arg3[%15, %c127] : memref<1x256xf32, #tpu.memory_space<vmem>>, vector<1x16xf32>
    %17 = arith.index_cast %10 : i32 to index
    %c128_10 = arith.constant 128 : index
    %18 = vector.load %arg3[%17, %c128_10] : memref<1x256xf32, #tpu.memory_space<vmem>>, vector<1x16xf32>
    %19 = arith.index_cast %10 : i32 to index
    %c129 = arith.constant 129 : index
    %20 = vector.load %arg3[%19, %c129] : memref<1x256xf32, #tpu.memory_space<vmem>>, vector<1x16xf32>
    %21 = arith.index_cast %10 : i32 to index
    %c130 = arith.constant 130 : index
    %22 = vector.load %arg3[%21, %c130] : memref<1x256xf32, #tpu.memory_space<vmem>>, vector<1x16xf32>
    %23 = arith.index_cast %10 : i32 to index
    %c131 = arith.constant 131 : index
    %24 = vector.load %arg3[%23, %c131] : memref<1x256xf32, #tpu.memory_space<vmem>>, vector<1x16xf32>
    %25 = tpu.concatenate %12, %14, %16, %18, %20, %22, %24 in 0 : vector<1x16xf32>, vector<1x16xf32>, vector<1x16xf32>, vector<1x16xf32>, vector<1x16xf32>, vector<1x16xf32>, vector<1x16xf32> -> vector<7x16xf32>
    %26 = arith.index_cast %10 : i32 to index
    %c0_11 = arith.constant 0 : index
    %c0_12 = arith.constant 0 : index
    %27 = vector.load %arg2[%26, %c0_11, %c0_12] : memref<1x7x16xf32, #tpu.memory_space<vmem>>, vector<1x7x16xf32>
    %28 = vector.shape_cast %27 : vector<1x7x16xf32> to vector<7x16xf32>
    %29 = vector.shape_cast %25 : vector<7x16xf32> to vector<1x7x16xf32>
    tpu.vector_store %arg2[%26, %c0_11, %c0_12], %29 {strides = array<i32>} : memref<1x7x16xf32, #tpu.memory_space<vmem>>, vector<1x7x16xf32>,
    %c1_i32_13 = arith.constant 1 : i32
    return
  }
  func.func @transform_0(%arg0: i32) -> (i32, i32, i32) {
    %c0_i32 = arith.constant 0 : i32
    %c0_i32_0 = arith.constant 0 : i32
    %c0_i32_1 = arith.constant 0 : i32
    return %arg0, %c0_i32, %c0_i32_0 : i32, i32, i32
  }
  func.func @transform_1(%arg0: i32) -> (i32, i32, i32) {
    %c0_i32 = arith.constant 0 : i32
    %c0_i32_0 = arith.constant 0 : i32
    %c0_i32_1 = arith.constant 0 : i32
    return %arg0, %c0_i32, %c0_i32_0 : i32, i32, i32
  }
}

</mosaic_0001>

<bundles_post_ra>
// kernel: tpu_custom_call.1
= control target key start
LH: loop header
LB: loop body
LE: loop exit
PB: predicated region body
PF: predicated region fallthrough
CT: control target
= control target key end

     0   :  { %6 = vsyncpa [#allocation4], 0  ;;  %s545_s0 = inlined_call_operand.hbm [shape: f32[2,4,16], index: 0, kind: input, shape index: {}]   ;;  %s546_s1 = inlined_call_operand.vmem [shape: f32[2,7,16], index: 1, kind: output, shape index: {}]  }
   0x1   :  { %8 = vsyncpa [#allocation4 + $0x1], 0  ;;  %s438_s6 = smov 0   ;;  %s440_s7 = smov 0  }
   0x2   :  { %s442_s8 = smov 0   ;;  %s444_s9 = smov 0  }
   0x3 LB: > { %s457_s10 = sadd.s32 4294967295, %s417_s9   ;;  %s460_s11 = sadd.s32 1, %s417_s9   ;;  %s417_s9 = sphi %s444_s9, %s554_s9   ;;  %s413_s8 = sphi %s442_s8, %s553_s8   ;;  %s409_s7 = sphi %s440_s7, %s552_s7   ;;  %s405_s6 = sphi %s438_s6, %s551_s6  }
   0x4   : > { %s18_s12 = ssub.s32 %s417_s9, %s460_s11  ;;  %s21_s13 = sadd.s32 1, %s413_s8 }
   0x5   : > { %p19_p0 = scmp.eq.s32.totalorder %s18_s12, 0  ;;  %p28_p1 = scmp.ne.s32.totalorder %s413_s8, %s409_s7 }
   0x6   : > { %p29_p2 = scmp.eq.s32.totalorder %s417_s9, 0  ;;  %p34_p3 = scmp.ne.s32.totalorder %s409_s7, %s405_s6 }
   0x7   : > { %s470_s14 = scalar_select %p19_p0, %s413_s8, %s21_s13  }
   0x8   : > { %p30_p4 = por %p29_p2, %p28_p1  ;;  %p35_p5 = scmp.eq.s32.totalorder %s457_s10, 0 }
   0x9   : > { %p312_p6 = scmp.lt.s32.totalorder %s417_s9, 2  ;;  %s84_s16 = sand.u32 1, %s413_s8  }
   0xa   : > { %p474_p7 = por %p35_p5, %p34_p3  ;;  %s298_s17 = sshll.u32 %s84_s16, 2 }
   0xb   : > { %s299_s18 = sshll.u32 %s417_s9, 6  ;;  %s88_s22 = scalar_lea.vmem [#allocation3], %s298_s17 }
   0xc   : > { %s483_s21 = scalar_lea.hbm %s545_s0, %s299_s18  ;;  %s95_s23 = sshll.u32 %s88_s22, 4  ;;  %s485_s23 = int_to_ptr.vmem [resolvable:$true] %s95_s23 }
   0xd   : > { %p487_p8 = pnand %p312_p6, %p30_p4  ;;  %s85_s25 = scalar_lea.sflag [#allocation4], %s84_s16 }
   0xe   : > { %s353_s26 = scalar_lea.hbm %s483_s21, 64  ;;  %s358_s29 = scalar_lea.hbm %s545_s0, 128 }
   0xf   : > { %p354_p11 = scmp.ne.s32.totalorder %s483_s21, %s353_s26  ;;  %p355_p12 = pneg %p487_p8 }
  0x10   : > { %p359_p1 = scmp.lt.u32.totalorder %s483_s21, %s545_s0  ;;  %p360_p2 = scmp.lt.u32.totalorder %s358_s29, %s353_s26 }
  0x11   : > { %p356_p13 = pnand %p355_p12, %p354_p11  ;;  %p362_p4 = scmp.lt.u32.totalorder %s353_s26, %s483_s21 }
  0x12   : > { %p361_p3 = por %p360_p2, %p359_p1 }
  0x13   : > { %p357_p0 = pneg %p356_p13 }
  0x14   : > { %p363_p5 = por %p362_p4, %p361_p3 }
  0x16   : > { %p364_p6 = pnand %p363_p5, %p357_p0 }
  0x18   : > { %367 = shalt.err (!%p364_p6)
}
  0x19   : > { %s368_s3 = scalar_lea.vmem %s485_s23, 64  ;;  %s419_s4 = smov [#allocation3]  }
  0x1a   : > { %p369_p11 = scmp.ne.s32.totalorder %s485_s23, %s368_s3  ;;  %s373_s5 = sshll.u32 %s419_s4, 4  ;;  %s374_s5 = int_to_ptr.vmem [resolvable:$false] %s373_s5 }
  0x1b   : > { %s375_s6 = scalar_lea.vmem %s374_s5, 128  ;;  %p376_p10 = scmp.lt.s32.totalorder %s485_s23, %s374_s5 }
  0x1c   : > { %p371_p13 = pnand %p369_p11, %p355_p12  ;;  %p377_p1 = scmp.lt.s32.totalorder %s375_s6, %s368_s3 }
  0x1e   : > { %p372_p9 = pneg %p371_p13  ;;  %p378_p2 = por %p377_p1, %p376_p10 }
  0x20   : > { %p379_p3 = pnand %p378_p2, %p372_p9 }
  0x22   : > { %382 = shalt.err (!%p379_p3)
}
  0x23   : > { %311 = dma.hbm_to_vmem [thread:$0]  (!%p487_p8), %s483_s21, 64, %s485_s23, %s85_s25  }
  0x24   : > { %p549_p0 = scmp.lt.s32.totalorder %s417_s9, 3  ;;  %p550_p4 = scmp.ge.s32.totalorder %s417_s9, 1 }
  0x26   : > { %p101_p12 = pnand %p550_p4, %p549_p0 }
  0x27   : > { %s106_s12 = sand.u32 (!%p101_p12), 1, %s409_s7  }
  0x28   : > { %104 = sbr.rel (%p101_p12) target bundleno = 320 (0x140), region = 24  ;;  %s301_s13 = sshll.u32 (!%p101_p12), %s106_s12, 2 }
  0x29   : > { %s107_s16 = scalar_lea.sflag (!%p101_p12), [#allocation4], %s106_s12  ;;  %s110_s17 = scalar_lea.vmem (!%p101_p12), [#allocation3], %s301_s13 }
  0x2f   : > { %400 = dma.done.wait (%p474_p7), %s107_s16, 64  }
  0x30   : > { %402 = vsyncadd (%p474_p7), %s107_s16, 4294967232  ;;  %v132_v0 = vlaneseq  ;;  %v420_v1 = vmov 0.0   ;;  %vm141_vm5 = vcmask 125952   ;;  %v140_v2 = vld [vmem:[%s110_s17] sm:$0xf]  ;;  %s421_s9 = smov 126  }
  0x31   : > { %v142_v3 = vsel %vm141_vm5, %v140_v2, 0.0  ;;  %s422_s15 = smov 127   ;;  %s423_s18 = smov 125   ;;  %vm180_vm7 = vcmask 1031168   ;;  %vm172_vm8 = vcmask 1039360   ;;  %vm201_vm9 = vcmask 1040384  }
  0x32   : > { %vm133_vm0 = vcmp.ge.s32.totalorder %v132_v0, 125  ;;  %vm134_vm1 = vcmp.lt.s32.totalorder %v132_v0, 128  ;;  %vm137_vm2 = vcmp.ge.s32.totalorder %v132_v0, 16  ;;  %v143_v4 = vrot.slane %v142_v3, 4  ;;  %s424_s19 = smov 124   ;;  %s425_s20 = smov 123  }
  0x33   : > { %vm135_vm3 = vmand %vm133_vm0, %vm134_vm1  ;;  %vm152_vm6 = vcmp.lt.s32.totalorder %v132_v0, 16  ;;  %v159_v11 = vshrl.u32 %v132_v0, 7  ;;  %s426_s21 = smov 122   ;;  %vm204_vm10 = vcmask 1041408   ;;  %vm207_vm11 = vcmask 1042432   ;;  %s427_s22 = smov 3  }
  0x34   : > { %136 = vst.msk [vmem:[#allocation2] sm:$0x1] %vm135_vm3, %v420_v1  ;;  %vm138_vm4 = vmand %vm137_vm2, %vm134_vm1  ;;  %v144_v5 = vadd.f32 %v143_v4, %v142_v3  ;;  %vm210_vm12 = vcmask 1043456   ;;  %vm213_vm13 = vcmask 1044480   ;;  %vm216_vm14 = vcmask 1045504   ;;  %p128_p7 = scmp.lt.s32.totalorder %s457_s10, 1 }
  0x35   : > { %139 = vst.msk [vmem:[#allocation2 + $0x1] sm:$0x1] %vm138_vm4, %v420_v1  ;;  %v160_v12 = vsub.s32 0, %v159_v11  ;;  %v164_v13 = vsub.s32 1, %v159_v11  ;;  %vm225_vm15 = vcmask 23552   ;;  %vm228_vm0 = vcmask 129024  }
  0x36   : > { %v145_v6 = vrot.slane %v144_v5, 2  ;;  %s556_s10 = smov (!%p128_p7, %s457_s10), 1 }
  0x37   : > { %s302_s23 = sshll.u32 %s556_s10, 3 }
  0x38   : > { %v146_v7 = vadd.f32 %v145_v6, %v144_v5  ;;  %s131_s26 = scalar_lea.vmem %s546_s1, %s302_s23 }
  0x3a   : > { %v147_v8 = vrot.slane %v146_v7, 1 }
  0x3c   : > { %v148_v9 = vadd.f32 %v147_v8, %v146_v7 }
  0x3e   : > { %v150_v10 = vmul.f32 0.25, %v148_v9 }
  0x40   : > { %154 = vst.msk [vmem:[#allocation2 + $0x1] sm:$0x1] %vm152_vm6, %v150_v10 }
  0x47   : > { %v155_v14 = vld [vmem:[#allocation2] sm:$0x3] }
  0x48   : > { %v161_v15 = vrot.slane %v155_v14, %v160_v12  ;;  %v165_v16 = vrot.slane %v155_v14, %v164_v13  ;;  %v303_v17 = vld [vmem:[#allocation2 + $0x1] ss:$0 sm:$0xff] }
  0x4a   : > { %176 = vrot.lane.b32.xlu1 %v161_v15, %s421_s9  ;;  %168 = vrot.lane.b32.xlu0 %v161_v15, %s422_s15 }
  0x4e   : > { %178 = vrot.lane.b32.xlu1 %v165_v16, %s421_s9  ;;  %170 = vrot.lane.b32.xlu0 %v165_v16, %s422_s15 }
  0x52   : > { %189 = vrot.lane.b32.xlu0 %v303_v17, %s423_s18  ;;  %192 = vrot.lane.b32.xlu1 %v303_v17, %s424_s19 }
  0x56   : > { %195 = vrot.lane.b32.xlu0 %v303_v17, %s425_s20  ;;  %198 = vrot.lane.b32.xlu1 %v303_v17, %s426_s21 }
  0xbc   : > { %v177_v18 = vpop.permute.xlu1 %176  ;;  %v169_v19 = vpop.permute.xlu0 %168 }
  0xc0   : > { %v179_v20 = vpop.permute.xlu1 %178  ;;  %v171_v21 = vpop.permute.xlu0 %170 }
  0xc1   : > { %v181_v22 = vsel %vm180_vm7, %v177_v18, %v179_v20  ;;  %v173_v23 = vsel %vm172_vm8, %v169_v19, %v171_v21  ;;  %v203_v24 = vsel %vm201_vm9, %v165_v16, %v171_v21 }
  0xc2   : > { %v202_v25 = vsel %vm201_vm9, %v161_v15, %v173_v23  ;;  %v206_v27 = vsel %vm204_vm10, %v203_v24, %v179_v20 }
  0xc3   : > { %v205_v26 = vsel %vm204_vm10, %v202_v25, %v181_v22 }
  0xc4   : > { %v190_v28 = vpop.permute.xlu0 %189  ;;  %v193_v29 = vpop.permute.xlu1 %192 }
  0xc5   : > { %v208_v30 = vsel %vm207_vm11, %v205_v26, %v190_v28  ;;  %v209_v31 = vsel %vm207_vm11, %v206_v27, %v190_v28 }
  0xc6   : > { %v211_v32 = vsel %vm210_vm12, %v208_v30, %v193_v29  ;;  %v212_v33 = vsel %vm210_vm12, %v209_v31, %v193_v29 }
  0xc8   : > { %v196_v34 = vpop.permute.xlu0 %195  ;;  %v199_v35 = vpop.permute.xlu1 %198 }
  0xc9   : > { %v214_v36 = vsel %vm213_vm13, %v211_v32, %v196_v34  ;;  %v215_v37 = vsel %vm213_vm13, %v212_v33, %v196_v34 }
  0xca   : > { %v218_v38 = vsel %vm216_vm14, %v215_v37, %v199_v35  ;;  %v217_v39 = vsel %vm216_vm14, %v214_v36, %v199_v35 }
  0xcb   : > { %223 = vrot.lane.b32.xlu1 %v218_v38, %s427_s22  ;;  %221 = vrot.lane.b32.xlu0 %v217_v39, %s427_s22 }
 0x13d   : > { %v224_v40 = vpop.permute.xlu1 %223  ;;  %v222_v41 = vpop.permute.xlu0 %221 }
 0x13e   : > { %v226_v42 = vsel %vm225_vm15, %v222_v41, %v224_v40 }
 0x13f   : > { %229 = vst.msk [vmem:[%s131_s26] sm:$0x7f] %vm228_vm0, %v226_v42 }
 0x140 PF: > { %p11_p8 = scmp.ge.s32.totalorder %s460_s11, 4   ;;  %s551_s6 = smov %s409_s7 }
 0x141   : > { %s552_s7 = smov %s413_s8  ;;  %s553_s8 = smov %s470_s14 }
 0x142   : > { %s554_s9 = smov %s460_s11  ;;  %13 = sbr.rel (!%p11_p8) target bundleno = 3 (0x3), region = 64 }
 0x149   :  { %249 = vsyncpa [#allocation4], 1 }
 0x14a   :  { %251 = vsyncpa [#allocation4 + $0x1], 1 }

</bundles_post_ra>
